<compile_context>
chip_gen: v7x
topology: tpu7x:2x2x1
jax: 0.10.0
libtpu: 0.0.40
codegen_flags: <defaults>
</compile_context>

<pallas_src>
import functools
import math

import jax
import jax.numpy as jnp
from jax.experimental import pallas as pl
from jax.experimental.pallas import tpu as pltpu

LANE = 128     # lane width: hidden/output feature dims are padded to this
SUBLANE = 8    # f32 sublane packing: batch tiles are multiples of this


def _round_up(x, m):
    return (x + m - 1) // m * m


# ----------------------------------------------------------------------------
# Fused Pallas kernel: the entire MLP forward for one batch tile.
# refs = (x_ref, w0_ref, b0_ref, w1_ref, b1_ref, ..., wL_ref, bL_ref, o_ref)
# ----------------------------------------------------------------------------
def _fused_mlp_kernel(*refs, n_layers):
    x_ref = refs[0]
    o_ref = refs[-1]

    # Cast once in-kernel (input streams from HBM at its natural f32 width).
    h = x_ref[...].astype(jnp.bfloat16)                    # (TILE_B, F_in)
    for l in range(n_layers):
        w = refs[1 + 2 * l][...]                           # bf16 (Fin, Fout_pad)
        b = refs[2 + 2 * l][...]                           # f32  (1, Fout_pad)
        # bf16 operands on the MXU, f32 accumulation; bias add in f32.
        y = jnp.dot(h, w, preferred_element_type=jnp.float32) + b
        if l < n_layers - 1:
            # ReLU in f32 off the accumulator, single cast back to bf16.
            h = jnp.maximum(y, 0.0).astype(jnp.bfloat16)
        else:
            # Final layer: only column 0 is real.  Transpose (XLU slot has
            # slack) to a lane-dense row, slice, sigmoid, store (1, TILE_B).
            yt = jnp.transpose(y)                          # (Fout_pad, TILE_B)
            o_ref[...] = jax.nn.sigmoid(yt[0:1, :]).astype(o_ref.dtype)


# ----------------------------------------------------------------------------
# Parameter construction (deterministic, PyTorch-Linear-style uniform init).
# Logical shapes: W[in, out] (transposed vs. PyTorch's [out, in]), b[1, out].
# ----------------------------------------------------------------------------
def init_netmlp_params(key, input_size, layer_sizes):
    dims = [input_size] + list(layer_sizes) + [1]
    params = []
    for i in range(len(dims) - 1):
        fan_in, fan_out = dims[i], dims[i + 1]
        key, kw, kb = jax.random.split(key, 3)
        bound = 1.0 / math.sqrt(fan_in)
        w = jax.random.uniform(kw, (fan_in, fan_out), jnp.float32, -bound, bound)
        b = jax.random.uniform(kb, (1, fan_out), jnp.float32, -bound, bound)
        params.append((w, b))
    return params


# ----------------------------------------------------------------------------
# One-time prep: zero-pad hidden/output feature dims to 128-lane multiples and
# cast W -> bf16.  The INPUT feature dim is left at its natural size (Mosaic
# pads the K contraction in-vreg, not in HBM).  Zero padding keeps the math
# exact: padded hidden columns are identically 0 (zero weight cols + zero bias
# -> ReLU(0)=0), and padded final columns are sliced off.
# ----------------------------------------------------------------------------
def prepare_netmlp_params(params):
    in_dim = params[0][0].shape[0]
    dims = [in_dim] + [w.shape[1] for w, _ in params]
    pdims = [in_dim] + [_round_up(d, LANE) for d in dims[1:]]
    padded = []
    for l, (w, b) in enumerate(params):
        in_p, out_p = pdims[l], pdims[l + 1]
        w_p = jnp.zeros((in_p, out_p), jnp.bfloat16)
        w_p = w_p.at[: w.shape[0], : w.shape[1]].set(w.astype(jnp.bfloat16))
        b_p = jnp.zeros((1, out_p), jnp.float32)
        b_p = b_p.at[:, : b.shape[1]].set(b)
        padded.append((w_p, b_p))
    return {"params": padded, "dims": dims, "pdims": pdims}


# ----------------------------------------------------------------------------
# Fused forward pass (single pallas_call).  Mirrors NetMLP.forward in eval mode.
# TODO(synk): training-mode dropout (random mask + 1/(1-p) scaling) not modeled.
# ----------------------------------------------------------------------------
def netmlp_forward(x, prepped, *, max_tile_b=1024):
    params = prepped["params"]
    dims = prepped["dims"]
    B, F_in = x.shape
    assert F_in == dims[0]
    n_layers = len(params)

    # ---- batch tiling --------------------------------------------------
    if B <= 256:
        # Single tile: the (1, tile_b) output block equals the full output
        # dims, so tile_b only needs f32 sublane (8) alignment.
        tile_b = _round_up(B, SUBLANE)
    else:
        # Multi-tile: tile must be a multiple of 128 (lane-dense output
        # blocks).  Cap so the grid has >= 2 steps (v7x megacore) and at most
        # max_tile_b rows (plenty of VMEM headroom on v5e/v6e/v7x).
        tile_b = min(_round_up(max_tile_b, LANE),
                     _round_up(pl.cdiv(B, 2), LANE))
    grid_b = pl.cdiv(B, tile_b)
    b_pad = grid_b * tile_b

    flat_params = []
    # x streams at its natural (B, F_in) f32 shape; last dim == full array dim.
    in_specs = [pl.BlockSpec((tile_b, F_in), lambda i: (i, 0))]
    for w_p, b_p in params:
        flat_params.extend([w_p, b_p])
        # Constant index_map -> fetched once, VMEM-resident for all steps.
        in_specs.append(pl.BlockSpec(w_p.shape, lambda i: (0, 0)))
        in_specs.append(pl.BlockSpec(b_p.shape, lambda i: (0, 0)))

    out = pl.pallas_call(
        functools.partial(_fused_mlp_kernel, n_layers=n_layers),
        out_shape=jax.ShapeDtypeStruct((1, b_pad), jnp.float32),
        grid_spec=pltpu.PrefetchScalarGridSpec(
            num_scalar_prefetch=0,
            grid=(grid_b,),
            in_specs=in_specs,
            # Lane-dense (1, tile_b) output row per batch tile.
            out_specs=pl.BlockSpec((1, tile_b), lambda i: (0, i)),
        ),
        compiler_params=pltpu.CompilerParams(
            dimension_semantics=("parallel",),   # shard batch tiles on v7x
        ),
    )(x, *flat_params)

    return out[0, :B].reshape(B, 1)              # logical (B, 1)


# ----------------------------------------------------------------------------
# Pure-JAX references.
# ----------------------------------------------------------------------------
def netmlp_forward_ref(x, params, *, matmul_dtype=jnp.float32):
    h = x
    for w, b in params[:-1]:
        y = jnp.dot(h.astype(matmul_dtype), w.astype(matmul_dtype),
                    preferred_element_type=jnp.float32) + b
        h = jnp.maximum(y, 0.0)
    w, b = params[-1]
    y = jnp.dot(h.astype(matmul_dtype), w.astype(matmul_dtype),
                preferred_element_type=jnp.float32) + b
    return jax.nn.sigmoid(y)


if __name__ == "__main__":
    key = jax.random.PRNGKey(0)
    key, kx, kp = jax.random.split(key, 3)

    batch = 300            # > 256: exercises the 2-step grid + ragged last tile
    input_size = 32
    layer_sizes = [64, 32]

    x = jax.random.normal(kx, (batch, input_size), jnp.float32)
    params = init_netmlp_params(kp, input_size, layer_sizes)
    prepped = prepare_netmlp_params(params)

    out = netmlp_forward(x, prepped)
    out = jax.block_until_ready(out)
    assert out.shape == (batch, 1)

    # Tight check vs. a reference using the same bf16-matmul / f32-accum
    # recipe, and a looser sanity check vs. the pure-f32 forward (semantics).
    ref_bf16 = netmlp_forward_ref(x, params, matmul_dtype=jnp.bfloat16)
    ref_f32 = netmlp_forward_ref(x, params, matmul_dtype=jnp.float32)
    assert jnp.allclose(out, ref_bf16, atol=2e-3, rtol=2e-3)
    assert jnp.allclose(out, ref_f32, atol=5e-2, rtol=5e-2)

    print("KERNEL_OK")
</pallas_src>

<mosaic_0001>
module attributes {stable_mosaic.version = 11 : i64} {
  func.func @_fused_mlp_kernel(%arg0: i32, %arg1: memref<256x32xf32, #tpu.memory_space<vmem>>, %arg2: memref<32x128xbf16, #tpu.memory_space<vmem>>, %arg3: memref<1x128xf32, #tpu.memory_space<vmem>>, %arg4: memref<128x128xbf16, #tpu.memory_space<vmem>>, %arg5: memref<1x128xf32, #tpu.memory_space<vmem>>, %arg6: memref<128x128xbf16, #tpu.memory_space<vmem>>, %arg7: memref<1x128xf32, #tpu.memory_space<vmem>>, %arg8: memref<1x256xf32, #tpu.memory_space<vmem>>) attributes {dimension_semantics = [#tpu.dimension_semantics<parallel>], iteration_bounds = array<i64: 2>, scalar_prefetch = 0 : i64, scratch_operands = 0 : i64, tpu.core_type = #tpu.core_type<tc>, window_params = [{transform_indices = @transform_0, window_bounds = array<i64: 256, 32>}, {pipeline_mode = #tpu.pipeline_mode<synchronous>, transform_indices = @transform_1, window_bounds = array<i64: 32, 128>}, {pipeline_mode = #tpu.pipeline_mode<synchronous>, transform_indices = @transform_2, window_bounds = array<i64: 1, 128>}, {pipeline_mode = #tpu.pipeline_mode<synchronous>, transform_indices = @transform_3, window_bounds = array<i64: 128, 128>}, {pipeline_mode = #tpu.pipeline_mode<synchronous>, transform_indices = @transform_4, window_bounds = array<i64: 1, 128>}, {pipeline_mode = #tpu.pipeline_mode<synchronous>, transform_indices = @transform_5, window_bounds = array<i64: 128, 128>}, {pipeline_mode = #tpu.pipeline_mode<synchronous>, transform_indices = @transform_6, window_bounds = array<i64: 1, 128>}, {transform_indices = @transform_7, window_bounds = array<i64: 1, 256>}]} {
    %c0 = arith.constant 0 : index
    %c0_0 = arith.constant 0 : index
    %0 = vector.load %arg1[%c0, %c0_0] : memref<256x32xf32, #tpu.memory_space<vmem>>, vector<256x32xf32>
    %1 = arith.truncf %0 : vector<256x32xf32> to vector<256x32xbf16>
    %c0_1 = arith.constant 0 : index
    %c0_2 = arith.constant 0 : index
    %2 = vector.load %arg2[%c0_1, %c0_2] : memref<32x128xbf16, #tpu.memory_space<vmem>>, vector<32x128xbf16>
    %c0_3 = arith.constant 0 : index
    %c0_4 = arith.constant 0 : index
    %3 = vector.load %arg3[%c0_3, %c0_4] : memref<1x128xf32, #tpu.memory_space<vmem>>, vector<1x128xf32>
    %cst = arith.constant dense<0.000000e+00> : vector<256x128xf32>
    %4 = tpu.matmul %1, %2, %cst {dimension_numbers = #tpu.dot_dimension_numbers<[1], [0], [0], [1], [0, 0, 1, 1], [], []>} : vector<256x32xbf16>, vector<32x128xbf16>, vector<256x128xf32> -> vector<256x128xf32>
    %5 = vector.broadcast %3 : vector<1x128xf32> to vector<256x128xf32>
    %6 = arith.addf %4, %5 : vector<256x128xf32>
    %cst_5 = arith.constant 0.000000e+00 : f32
    %7 = vector.broadcast %cst_5 : f32 to vector<256x128xf32>
    %8 = arith.maximumf %6, %7 : vector<256x128xf32>
    %9 = arith.truncf %8 : vector<256x128xf32> to vector<256x128xbf16>
    %c0_6 = arith.constant 0 : index
    %c0_7 = arith.constant 0 : index
    %10 = vector.load %arg4[%c0_6, %c0_7] : memref<128x128xbf16, #tpu.memory_space<vmem>>, vector<128x128xbf16>
    %c0_8 = arith.constant 0 : index
    %c0_9 = arith.constant 0 : index
    %11 = vector.load %arg5[%c0_8, %c0_9] : memref<1x128xf32, #tpu.memory_space<vmem>>, vector<1x128xf32>
    %cst_10 = arith.constant dense<0.000000e+00> : vector<256x128xf32>
    %12 = tpu.matmul %9, %10, %cst_10 {dimension_numbers = #tpu.dot_dimension_numbers<[1], [0], [0], [1], [0, 0, 1, 1], [], []>} : vector<256x128xbf16>, vector<128x128xbf16>, vector<256x128xf32> -> vector<256x128xf32>
    %13 = vector.broadcast %11 : vector<1x128xf32> to vector<256x128xf32>
    %14 = arith.addf %12, %13 : vector<256x128xf32>
    %cst_11 = arith.constant 0.000000e+00 : f32
    %15 = vector.broadcast %cst_11 : f32 to vector<256x128xf32>
    %16 = arith.maximumf %14, %15 : vector<256x128xf32>
    %17 = arith.truncf %16 : vector<256x128xf32> to vector<256x128xbf16>
    %c0_12 = arith.constant 0 : index
    %c0_13 = arith.constant 0 : index
    %18 = vector.load %arg6[%c0_12, %c0_13] : memref<128x128xbf16, #tpu.memory_space<vmem>>, vector<128x128xbf16>
    %c0_14 = arith.constant 0 : index
    %c0_15 = arith.constant 0 : index
    %19 = vector.load %arg7[%c0_14, %c0_15] : memref<1x128xf32, #tpu.memory_space<vmem>>, vector<1x128xf32>
    %cst_16 = arith.constant dense<0.000000e+00> : vector<256x128xf32>
    %20 = tpu.matmul %17, %18, %cst_16 {dimension_numbers = #tpu.dot_dimension_numbers<[1], [0], [0], [1], [0, 0, 1, 1], [], []>} : vector<256x128xbf16>, vector<128x128xbf16>, vector<256x128xf32> -> vector<256x128xf32>
    %21 = vector.broadcast %19 : vector<1x128xf32> to vector<256x128xf32>
    %22 = arith.addf %20, %21 : vector<256x128xf32>
    %23 = tpu.transpose %22, [1, 0] : vector<256x128xf32> -> vector<128x256xf32>
    %24 = vector.extract_strided_slice %23 {offsets = [0, 0], sizes = [1, 256], strides = [1, 1]} : vector<128x256xf32> to vector<1x256xf32>
    %25 = arith.negf %24 : vector<1x256xf32>
    %26 = math.exp %25 : vector<1x256xf32>
    %cst_17 = arith.constant 1.000000e+00 : f32
    %27 = vector.broadcast %cst_17 : f32 to vector<1x256xf32>
    %28 = arith.addf %27, %26 : vector<1x256xf32>
    %29 = arith.divf %27, %28 : vector<1x256xf32>
    %c0_18 = arith.constant 0 : index
    %c0_19 = arith.constant 0 : index
    %30 = vector.load %arg8[%c0_18, %c0_19] : memref<1x256xf32, #tpu.memory_space<vmem>>, vector<1x256xf32>
    tpu.vector_store %arg8[%c0_18, %c0_19], %29 {strides = array<i32>} : memref<1x256xf32, #tpu.memory_space<vmem>>, vector<1x256xf32>,
    return
  }
  func.func @transform_0(%arg0: i32) -> (i32, i32) {
    %c0_i32 = arith.constant 0 : i32
    %c0_i32_0 = arith.constant 0 : i32
    return %arg0, %c0_i32 : i32, i32
  }
  func.func @transform_1(%arg0: i32) -> (i32, i32) {
    %c0_i32 = arith.constant 0 : i32
    %c0_i32_0 = arith.constant 0 : i32
    %c0_i32_1 = arith.constant 0 : i32
    return %c0_i32, %c0_i32_0 : i32, i32
  }
  func.func @transform_2(%arg0: i32) -> (i32, i32) {
    %c0_i32 = arith.constant 0 : i32
    %c0_i32_0 = arith.constant 0 : i32
    %c0_i32_1 = arith.constant 0 : i32
    return %c0_i32, %c0_i32_0 : i32, i32
  }
  func.func @transform_3(%arg0: i32) -> (i32, i32) {
    %c0_i32 = arith.constant 0 : i32
    %c0_i32_0 = arith.constant 0 : i32
    %c0_i32_1 = arith.constant 0 : i32
    return %c0_i32, %c0_i32_0 : i32, i32
  }
  func.func @transform_4(%arg0: i32) -> (i32, i32) {
    %c0_i32 = arith.constant 0 : i32
    %c0_i32_0 = arith.constant 0 : i32
    %c0_i32_1 = arith.constant 0 : i32
    return %c0_i32, %c0_i32_0 : i32, i32
  }
  func.func @transform_5(%arg0: i32) -> (i32, i32) {
    %c0_i32 = arith.constant 0 : i32
    %c0_i32_0 = arith.constant 0 : i32
    %c0_i32_1 = arith.constant 0 : i32
    return %c0_i32, %c0_i32_0 : i32, i32
  }
  func.func @transform_6(%arg0: i32) -> (i32, i32) {
    %c0_i32 = arith.constant 0 : i32
    %c0_i32_0 = arith.constant 0 : i32
    %c0_i32_1 = arith.constant 0 : i32
    return %c0_i32, %c0_i32_0 : i32, i32
  }
  func.func @transform_7(%arg0: i32) -> (i32, i32) {
    %c0_i32 = arith.constant 0 : i32
    %c0_i32_0 = arith.constant 0 : i32
    return %c0_i32, %arg0 : i32, i32
  }
}

</mosaic_0001>

<bundles_post_ra>
// kernel: tpu_custom_call.1
= control target key start
LH: loop header
LB: loop body
LE: loop exit
PB: predicated region body
PF: predicated region fallthrough
CT: control target
= control target key end

     0   :  { %12 = vsyncpa [#allocation3], 0  ;;  %s2061_s0 = inlined_call_operand.vmem [shape: f32[300,32], index: 0, kind: input, shape index: {}]   ;;  %s2062_s1 = inlined_call_operand.vmem [shape: bf16[32,128], index: 1, kind: input, shape index: {}]   ;;  %s2063_s2 = inlined_call_operand.vmem [shape: f32[1,128], index: 2, kind: input, shape index: {}]   ;;  %s2064_s3 = inlined_call_operand.vmem [shape: bf16[128,128], index: 3, kind: input, shape index: {}]   ;;  %s2065_s4 = inlined_call_operand.vmem [shape: f32[1,128], index: 4, kind: input, shape index: {}]   ;;  %s2066_s5 = inlined_call_operand.vmem [shape: bf16[128,128], index: 5, kind: input, shape index: {}]   ;;  %s2067_s6 = inlined_call_operand.vmem [shape: f32[1,128], index: 6, kind: input, shape index: {}]   ;;  %s2068_s7 = inlined_call_operand.hbm [shape: f32[1,512], index: 7, kind: output, shape index: {}]  }
   0x1   :  { %14 = vsyncpa [#allocation3 + $0x1], 0  ;;  %s1741_s24 = smov 0   ;;  %s1743_s25 = smov 0  }
   0x2   :  { %s1745_s26 = smov 0   ;;  %s1747_s27 = smov 0  }
   0x3 LB: > { %s1314_s28 = sadd.s32 4294967295, %s1697_s27   ;;  %s1315_s29 = sadd.s32 4294967294, %s1697_s27   ;;  %s1697_s27 = sphi %s1747_s27, %s2074_s27   ;;  %s1693_s26 = sphi %s1745_s26, %s2073_s26   ;;  %s1689_s25 = sphi %s1743_s25, %s2072_s25   ;;  %s1685_s24 = sphi %s1741_s24, %s2071_s24  }
   0x4   : > { %s1764_s30 = sadd.s32 1, %s1697_s27   ;;  %s179_s8 = sadd.s32 1, %s1693_s26 }
   0x5   : > { %s176_s9 = ssub.s32 %s1697_s27, %s1764_s30  ;;  %p189_p0 = scmp.ne.s32.totalorder %s1693_s26, %s1689_s25 }
   0x6   : > { %p177_p1 = scmp.eq.s32.totalorder %s176_s9, 0  ;;  %p190_p2 = scmp.eq.s32.totalorder %s1314_s28, 1 }
   0x7   : > { %p195_p3 = scmp.ne.s32.totalorder %s1689_s25, %s1685_s24  ;;  %p196_p4 = scmp.eq.s32.totalorder %s1315_s29, 1 }
   0x8   : > { %s1774_s10 = scalar_select %p177_p1, %s1693_s26, %s179_s8  }
   0x9   : > { %p1776_p5 = por %p190_p2, %p189_p0  ;;  %p1780_p6 = por %p196_p4, %p195_p3 }
   0xa   : > { %p1318_p7 = scmp.ge.s32.totalorder %s1697_s27, 1  ;;  %p249_p8 = scmp.lt.s32.totalorder %s1697_s27, 3 }
   0xc   : > { %p250_p9 = pnand %p1318_p7, %p249_p8 }
   0xd   : > { %v1609_v0 = vld [vmem:[%s2062_s1] sm:$0xff] (!%p250_p9)   ;;  %s1789_s15 = sshll.u32 (!%p250_p9), %s1314_s28, 5  ;;  %v1610_v1 = vld [vmem:[%s2062_s1 + $0x8] sm:$0xff] (!%p250_p9)   ;;  %vm372_vm0 = vcmask (!%p250_p9), 261120   ;;  %v1613_v29 = vld [vmem:[%s2064_s3 + $0x10] sm:$0xff] (!%p250_p9)   ;;  %s282_s19 = sand.u32 (!%p250_p9), 1, %s1689_s25  }
   0xe   : > { %253 = sbr.rel (%p250_p9) target bundleno = 895 (0x37f), region = 48  ;;  %p290_p10 = scmp.lt.s32.totalorder (!%p250_p9), %s1789_s15, 37  ;;  %1433 = vmatprep.subr.bf16.mxu0 (!%p250_p9), %v1609_v0  ;;  %1565 = vmatprep.subr.bf16.mxu1 (!%p250_p9), %v1609_v0  ;;  %v1611_v2 = vld [vmem:[%s2064_s3] sm:$0xff] (!%p250_p9)   ;;  %v1612_v24 = vld [vmem:[%s2064_s3 + $0x8] sm:$0xff] (!%p250_p9)   ;;  %v1614_v38 = vld [vmem:[%s2064_s3 + $0x18] sm:$0xff] (!%p250_p9)  }
   0xf   : > { %1434 = vmatpush3.bf16.msra.mxu0 (!%p250_p9), %v1609_v0  ;;  %1567 = vmatpush3.bf16.msra.mxu1 (!%p250_p9), %v1609_v0  ;;  %v1615_v46 = vld [vmem:[%s2064_s3 + $0x20] sm:$0xff] (!%p250_p9)   ;;  %v1616_v51 = vld [vmem:[%s2064_s3 + $0x28] sm:$0xff] (!%p250_p9)   ;;  %v1617_v56 = vld [vmem:[%s2064_s3 + $0x30] sm:$0xff] (!%p250_p9)   ;;  %s1319_s20 = sshll.u32 (!%p250_p9), %s282_s19, 1  ;;  %s1242_s8 = scalar_lea.sflag (!%p250_p9), [#allocation3], %s282_s19 }
  0x10   : > { %1435 = vmatprep.subr.bf16.mxu0 (!%p250_p9), %v1610_v1  ;;  %1566 = vmatprep.subr.bf16.mxu1 (!%p250_p9), %v1610_v1  ;;  %v1618_v57 = vld [vmem:[%s2064_s3 + $0x38] sm:$0xff] (!%p250_p9)   ;;  %v1619_v58 = vld [vmem:[%s2066_s5] sm:$0xff] (!%p250_p9)   ;;  %v1620_v59 = vld [vmem:[%s2066_s5 + $0x8] sm:$0xff] (!%p250_p9)   ;;  %s1700_s13 = smov (!%p250_p9), [#allocation2]  }
  0x11   : > { %v1621_v60 = vld [vmem:[%s2066_s5 + $0x10] sm:$0xff] (!%p250_p9)   ;;  %v1622_v61 = vld [vmem:[%s2066_s5 + $0x18] sm:$0xff] (!%p250_p9)   ;;  %v1623_v62 = vld [vmem:[%s2066_s5 + $0x20] sm:$0xff] (!%p250_p9)   ;;  %s1639_s14 = sshll.u32 (!%p250_p9), %s1700_s13, 4  ;;  %s1640_s14 = int_to_ptr.vmem [resolvable:$false] %s1639_s14 }
  0x12   : > { %v1624_v63 = vld [vmem:[%s2066_s5 + $0x28] sm:$0xff] (!%p250_p9)   ;;  %v1894_v0 = vld [vmem:[%s2063_s2] ss:$0 sm:$0xff] (!%p250_p9)  ;;  %s1641_s16 = scalar_lea.vmem (!%p250_p9), %s1640_s14, 64 }
  0x13   : > { %1436 = vmatpush3.bf16.msra.mxu0 (!%p250_p9), %v1610_v1  ;;  %1568 = vmatpush3.bf16.msra.mxu1 (!%p250_p9), %v1610_v1 }
  0x14   : > { %1469 = vmatprep.subr.bf16.mxu1 (!%p250_p9), %v1611_v2  ;;  %1517 = vmatprep.subr.bf16.mxu0 (!%p250_p9), %v1619_v58 }
  0x15   : > { %s291_s18 = scalar_select %p290_p10, %s1789_s15, 37 }
  0x17   : > { %s1321_s21 = sshll.u32 %s291_s18, 3 }
  0x18   : > { %s1802_s28 = scalar_lea.vmem %s2061_s0, %s1321_s21  ;;  %s284_s21 = scalar_lea.vmem [#allocation2], %s1319_s20 }
  0x19   : > { %v301_v3 = vld [vmem:[%s1802_s28] sm:$0xff]  ;;  %v302_v4 = vld [vmem:[%s1802_s28 + $0x8] sm:$0xff]  ;;  %v303_v5 = vld [vmem:[%s1802_s28 + $0x10] sm:$0xff]  ;;  %s1256_s22 = sshll.u32 %s284_s21, 4  ;;  %s2021_s22 = int_to_ptr.vmem [resolvable:$true] %s1256_s22 }
  0x1a   : > { %v333_v6 = vpack.c.bf16 %v302_v4, %v301_v3  ;;  %v304_v7 = vld [vmem:[%s1802_s28 + $0x18] sm:$0xff]  ;;  %v305_v8 = vld [vmem:[%s1802_s28 + $0x20] sm:$0xff]  ;;  %v306_v9 = vld [vmem:[%s1802_s28 + $0x28] sm:$0xff]  ;;  %s1635_s9 = scalar_lea.vmem %s2021_s22, 32  ;;  %p1642_p0 = scmp.lt.s32.totalorder %s2021_s22, %s1640_s14 }
  0x1b   : > { %v334_v10 = vpack.c.bf16 %v304_v7, %v303_v5  ;;  %v335_v11 = vpack.c.bf16 %v306_v9, %v305_v8  ;;  %v307_v12 = vld [vmem:[%s1802_s28 + $0x30] sm:$0xff]  ;;  %v308_v13 = vld [vmem:[%s1802_s28 + $0x38] sm:$0xff]  ;;  %v309_v14 = vld [vmem:[%s1802_s28 + $0x40] sm:$0xff]  ;;  %p1636_p11 = scmp.ne.s32.totalorder %s2021_s22, %s1635_s9  ;;  %p1643_p1 = scmp.lt.s32.totalorder %s1641_s16, %s1635_s9 }
  0x1c   : > { %1437 = vmatprep.mubr.msk.bf16.mxu0 %vm372_vm0, %v333_v6  ;;  %v310_v15 = vld [vmem:[%s1802_s28 + $0x48] sm:$0xff]  ;;  %v317_v16 = vld [vmem:[%s1802_s28 + $0x80] sm:$0xff]  ;;  %v319_v19 = vld [vmem:[%s1802_s28 + $0x90] sm:$0xff]  ;;  %v336_v25 = vpack.c.bf16 %v308_v13, %v307_v12 }
  0x1d   : > { %1438 = vmatmul.mubr.msk.bf16.vlgmr.msra.gmra.mrb[0].mxu0 %vm372_vm0, %v334_v10  ;;  %v318_v17 = vld [vmem:[%s1802_s28 + $0x88] sm:$0xff]  ;;  %v320_v20 = vld [vmem:[%s1802_s28 + $0x98] sm:$0xff]  ;;  %v321_v21 = vld [vmem:[%s1802_s28 + $0xa0] sm:$0xff]  ;;  %v337_v27 = vpack.c.bf16 %v310_v15, %v309_v14  ;;  %p1637_p12 = pnand %p1636_p11, %p1776_p5  ;;  %p1644_p2 = por %p1643_p1, %p1642_p0 }
  0x1e   : > { %1441 = vmatprep.mubr.msk.bf16.mxu0 %vm372_vm0, %v335_v11  ;;  %v341_v18 = vpack.c.bf16 %v318_v17, %v317_v16  ;;  %v342_v22 = vpack.c.bf16 %v320_v20, %v319_v19  ;;  %v322_v23 = vld [vmem:[%s1802_s28 + $0xa8] sm:$0xff]  ;;  %v323_v28 = vld [vmem:[%s1802_s28 + $0xb0] sm:$0xff]  ;;  %v324_v30 = vld [vmem:[%s1802_s28 + $0xb8] sm:$0xff]  ;;  %1518 = vmatpush3.bf16.msra.mxu0 %v1619_v58 }
  0x1f   : > { %v343_v26 = vpack.c.bf16 %v322_v23, %v321_v21  ;;  %v325_v31 = vld [vmem:[%s1802_s28 + $0xc0] sm:$0xff]  ;;  %v311_v32 = vld [vmem:[%s1802_s28 + $0x50] sm:$0xff]  ;;  %v312_v33 = vld [vmem:[%s1802_s28 + $0x58] sm:$0xff]  ;;  %v344_v37 = vpack.c.bf16 %v324_v30, %v323_v28  ;;  %1519 = vmatprep.subr.bf16.mxu0 %v1620_v59  ;;  %p1638_p13 = pneg %p1637_p12 }
  0x20   : > { %1453 = vmatprep.mubr.msk.bf16.mxu1 %vm372_vm0, %v341_v18  ;;  %v326_v34 = vld [vmem:[%s1802_s28 + $0xc8] sm:$0xff]  ;;  %v313_v35 = vld [vmem:[%s1802_s28 + $0x60] sm:$0xff]  ;;  %v338_v40 = vpack.c.bf16 %v312_v33, %v311_v32  ;;  %v327_v42 = vld [vmem:[%s1802_s28 + $0xd0] sm:$0xff] }
  0x21   : > { %1454 = vmatmul.mubr.msk.bf16.vlgmr.msra.gmra.mrb[0].mxu1 %vm372_vm0, %v342_v22  ;;  %v314_v36 = vld [vmem:[%s1802_s28 + $0x68] sm:$0xff]  ;;  %v345_v39 = vpack.c.bf16 %v326_v34, %v325_v31  ;;  %v328_v43 = vld [vmem:[%s1802_s28 + $0xd8] sm:$0xff]  ;;  %v329_v44 = vld [vmem:[%s1802_s28 + $0xe0] sm:$0xff]  ;;  %p1645_p3 = pnand %p1644_p2, %p1638_p13 }
  0x22   : > { %1457 = vmatprep.mubr.msk.bf16.mxu1 %vm372_vm0, %v343_v26  ;;  %1470 = vmatpush3.bf16.msra.mxu1 %v1611_v2  ;;  %v339_v41 = vpack.c.bf16 %v314_v36, %v313_v35  ;;  %v330_v45 = vld [vmem:[%s1802_s28 + $0xe8] sm:$0xff]  ;;  %v315_v47 = vld [vmem:[%s1802_s28 + $0x70] sm:$0xff]  ;;  %v316_v48 = vld [vmem:[%s1802_s28 + $0x78] sm:$0xff]  ;;  %v346_v49 = vpack.c.bf16 %v328_v43, %v327_v42 }
  0x23   : > { %1471 = vmatprep.subr.bf16.mxu1 %v1612_v24  ;;  %v347_v50 = vpack.c.bf16 %v330_v45, %v329_v44  ;;  %v340_v52 = vpack.c.bf16 %v316_v48, %v315_v47  ;;  %v331_v53 = vld [vmem:[%s1802_s28 + $0xf0] sm:$0xff]  ;;  %v332_v54 = vld [vmem:[%s1802_s28 + $0xf8] sm:$0xff]  ;;  %1520 = vmatpush3.bf16.msra.mxu0 %v1620_v59  ;;  %s2019_s28 = scalar_lea.hbm %s2068_s7, %s1789_s15 }
  0x24   : > { %v348_v55 = vpack.c.bf16 %v332_v54, %v331_v53  ;;  %1521 = vmatprep.subr.bf16.mxu0 %v1621_v60 }
  0x25   : > { %1442 = vmatmul.mubr.msk.bf16.gmra.mrb[4].mxu0 %vm372_vm0, %v336_v25 }
  0x26   : > { %1445 = vmatprep.mubr.msk.bf16.mxu0 %vm372_vm0, %v337_v27  ;;  %1472 = vmatpush3.bf16.msra.mxu1 %v1612_v24 }
  0x27   : > { %1473 = vmatprep.subr.bf16.mxu1 %v1613_v29  ;;  %1522 = vmatpush3.bf16.msra.mxu0 %v1621_v60 }
  0x28   : > { %1523 = vmatprep.subr.bf16.mxu0 %v1622_v61 }
  0x29   : > { %1458 = vmatmul.mubr.msk.bf16.gmra.mrb[4].mxu1 %vm372_vm0, %v344_v37 }
  0x2a   : > { %1461 = vmatprep.mubr.msk.bf16.mxu1 %vm372_vm0, %v345_v39  ;;  %1474 = vmatpush3.bf16.msra.mxu1 %v1613_v29 }
  0x2b   : > { %1475 = vmatprep.subr.bf16.mxu1 %v1614_v38  ;;  %1524 = vmatpush3.bf16.msra.mxu0 %v1622_v61 }
  0x2c   : > { %1525 = vmatprep.subr.bf16.mxu0 %v1623_v62 }
  0x2d   : > { %1446 = vmatmul.mubr.msk.bf16.gmra.mrb[8].mxu0 %vm372_vm0, %v338_v40 }
  0x2e   : > { %1449 = vmatprep.mubr.msk.bf16.mxu0 %vm372_vm0, %v339_v41  ;;  %1476 = vmatpush3.bf16.msra.mxu1 %v1614_v38 }
  0x2f   : > { %1477 = vmatprep.subr.bf16.mxu1 %v1615_v46  ;;  %1526 = vmatpush3.bf16.msra.mxu0 %v1623_v62 }
  0x30   : > { %1527 = vmatprep.subr.bf16.mxu0 %v1624_v63 }
  0x31   : > { %1462 = vmatmul.mubr.msk.bf16.gmra.mrb[8].mxu1 %vm372_vm0, %v346_v49 }
  0x32   : > { %1465 = vmatprep.mubr.msk.bf16.mxu1 %vm372_vm0, %v347_v50  ;;  %1478 = vmatpush3.bf16.msra.mxu1 %v1615_v46 }
  0x33   : > { %1479 = vmatprep.subr.bf16.mxu1 %v1616_v51  ;;  %1528 = vmatpush3.bf16.msra.mxu0 %v1624_v63 }
  0x35   : > { %1450 = vmatmul.mubr.msk.bf16.gmra.mrb[12].mxu0 %vm372_vm0, %v340_v52 }
  0x36   : > { %1480 = vmatpush3.bf16.msra.mxu1 %v1616_v51 }
  0x37   : > { %1481 = vmatprep.subr.bf16.mxu1 %v1617_v56 }
  0x39   : > { %1466 = vmatmul.mubr.msk.bf16.gmra.mrb[12].mxu1 %vm372_vm0, %v348_v55 }
  0x3a   : > { %1482 = vmatpush3.bf16.msra.mxu1 %v1617_v56 }
  0x3b   : > { %1483 = vmatprep.subr.bf16.mxu1 %v1618_v57 }
  0x3e   : > { %1484 = vmatpush3.bf16.msra.mxu1 %v1618_v57 }
  0xf0   : > { %v1439_v1 = vpop.f32.mrb[0].mxu0 }
  0xf1   : > { %v464_v2 = vadd.f32 %v1439_v1, %v1894_v0  ;;  %v455_v3 = vpop.f32.mrb[1].mxu0 }
  0xf2   : > { %v456_v4 = vadd.f32 %v1894_v0, %v455_v3  ;;  %v1440_v5 = vpop.f32.mrb[2].mxu0 }
  0xf3   : > { %v467_v6 = vadd.f32 %v1440_v5, %v1894_v0  ;;  %v458_v7 = vpop.f32.mrb[3].mxu0  ;;  %v584_v9 = vmax.f32 %v464_v2, 0.0 }
  0xf4   : > { %v459_v8 = vadd.f32 %v1894_v0, %v458_v7  ;;  %v1455_v11 = vpop.f32.mrb[0].mxu1  ;;  %v582_v12 = vmax.f32 %v456_v4, 0.0 }
  0xf5   : > { %v585_v10 = vmax.f32 %v467_v6, 0.0  ;;  %v528_v14 = vadd.f32 %v1455_v11, %v1894_v0  ;;  %v519_v15 = vpop.f32.mrb[1].mxu1 }
  0xf6   : > { %v583_v13 = vmax.f32 %v459_v8, 0.0  ;;  %v520_v17 = vadd.f32 %v1894_v0, %v519_v15  ;;  %v1456_v18 = vpop.f32.mrb[2].mxu1 }
  0xf7   : > { %v615_v16 = vpack.c.bf16 %v585_v10, %v584_v9  ;;  %v600_v21 = vmax.f32 %v528_v14, 0.0  ;;  %v531_v22 = vadd.f32 %v1456_v18, %v1894_v0  ;;  %v522_v23 = vpop.f32.mrb[3].mxu1 }
  0xf8   : > { %v614_v19 = vpack.c.bf16 %v583_v13, %v582_v12  ;;  %v1443_v20 = vpop.f32.mrb[4].mxu0  ;;  %v598_v26 = vmax.f32 %v520_v17, 0.0  ;;  %v523_v27 = vadd.f32 %v1894_v0, %v522_v23 }
  0xf9   : > { %v480_v24 = vadd.f32 %v1443_v20, %v1894_v0  ;;  %v471_v25 = vpop.f32.mrb[5].mxu0  ;;  %v601_v30 = vmax.f32 %v531_v22, 0.0 }
  0xfa   : > { %v472_v28 = vadd.f32 %v1894_v0, %v471_v25  ;;  %v1444_v29 = vpop.f32.mrb[6].mxu0  ;;  %1485 = vmatprep.mubr.bf16.mxu1 %v614_v19  ;;  %v599_v33 = vmax.f32 %v523_v27, 0.0 }
  0xfb   : > { %v483_v31 = vadd.f32 %v1444_v29, %v1894_v0  ;;  %v474_v32 = vpop.f32.mrb[7].mxu0  ;;  %1486 = vmatmul.mubr.bf16.vlgmr.msra.gmra.mrb[16].mxu1 %v615_v16  ;;  %v1908_v35 = vpack.c.bf16 %v601_v30, %v600_v21  ;;  %v588_v36 = vmax.f32 %v480_v24, 0.0 }
  0xfc   : > { %v475_v34 = vadd.f32 %v1894_v0, %v474_v32  ;;  %v1910_v38 = vpack.c.bf16 %v599_v33, %v598_v26  ;;  %v1459_v39 = vpop.f32.mrb[4].mxu1  ;;  %v586_v40 = vmax.f32 %v472_v28, 0.0 }
  0xfd   : > { %v589_v37 = vmax.f32 %v483_v31, 0.0  ;;  %v544_v42 = vadd.f32 %v1459_v39, %v1894_v0  ;;  %v535_v43 = vpop.f32.mrb[5].mxu1 }
  0xfe   : > { %v587_v41 = vmax.f32 %v475_v34, 0.0  ;;  %v536_v45 = vadd.f32 %v1894_v0, %v535_v43  ;;  %v1460_v46 = vpop.f32.mrb[6].mxu1 }
  0xff   : > { %v617_v44 = vpack.c.bf16 %v589_v37, %v588_v36  ;;  %v604_v49 = vmax.f32 %v544_v42, 0.0  ;;  %v547_v50 = vadd.f32 %v1460_v46, %v1894_v0  ;;  %v538_v51 = vpop.f32.mrb[7].mxu1 }
 0x100   : > { %v616_v47 = vpack.c.bf16 %v587_v41, %v586_v40  ;;  %v1447_v48 = vpop.f32.mrb[8].mxu0  ;;  %v602_v54 = vmax.f32 %v536_v45, 0.0  ;;  %v539_v55 = vadd.f32 %v1894_v0, %v538_v51 }
 0x101   : > { %v496_v52 = vadd.f32 %v1447_v48, %v1894_v0  ;;  %v487_v53 = vpop.f32.mrb[9].mxu0  ;;  %v605_v58 = vmax.f32 %v547_v50, 0.0 }
 0x102   : > { %v488_v56 = vadd.f32 %v1894_v0, %v487_v53  ;;  %v1448_v57 = vpop.f32.mrb[10].mxu0  ;;  %1489 = vmatprep.mubr.bf16.mxu1 %v616_v47  ;;  %v603_v61 = vmax.f32 %v539_v55, 0.0 }
 0x103   : > { %v499_v59 = vadd.f32 %v1448_v57, %v1894_v0  ;;  %v490_v60 = vpop.f32.mrb[11].mxu0  ;;  %1490 = vmatmul.mubr.bf16.gmra.mrb[20].mxu1 %v617_v44  ;;  %v625_v63 = vpack.c.bf16 %v605_v58, %v604_v49  ;;  %v592_v1 = vmax.f32 %v496_v52, 0.0 }
 0x104   : > { %v491_v62 = vadd.f32 %v1894_v0, %v490_v60  ;;  %v624_v3 = vpack.c.bf16 %v603_v61, %v602_v54  ;;  %v1463_v4 = vpop.f32.mrb[8].mxu1  ;;  %v590_v5 = vmax.f32 %v488_v56, 0.0 }
 0x105   : > { %v593_v2 = vmax.f32 %v499_v59, 0.0  ;;  %v560_v7 = vadd.f32 %v1463_v4, %v1894_v0  ;;  %v551_v8 = vpop.f32.mrb[9].mxu1 }
 0x106   : > { %v591_v6 = vmax.f32 %v491_v62, 0.0  ;;  %v552_v10 = vadd.f32 %v1894_v0, %v551_v8  ;;  %v1464_v11 = vpop.f32.mrb[10].mxu1 }
 0x107   : > { %v619_v9 = vpack.c.bf16 %v593_v2, %v592_v1  ;;  %v608_v14 = vmax.f32 %v560_v7, 0.0  ;;  %v563_v15 = vadd.f32 %v1464_v11, %v1894_v0  ;;  %v554_v16 = vpop.f32.mrb[11].mxu1 }
 0x108   : > { %v618_v12 = vpack.c.bf16 %v591_v6, %v590_v5  ;;  %v1451_v13 = vpop.f32.mrb[12].mxu0  ;;  %v606_v19 = vmax.f32 %v552_v10, 0.0  ;;  %v555_v20 = vadd.f32 %v1894_v0, %v554_v16 }
 0x109   : > { %v512_v17 = vadd.f32 %v1451_v13, %v1894_v0  ;;  %v503_v18 = vpop.f32.mrb[13].mxu0  ;;  %v609_v23 = vmax.f32 %v563_v15, 0.0 }
 0x10a   : > { %v504_v21 = vadd.f32 %v1894_v0, %v503_v18  ;;  %v1452_v22 = vpop.f32.mrb[14].mxu0  ;;  %1493 = vmatprep.mubr.bf16.mxu1 %v618_v12  ;;  %v607_v26 = vmax.f32 %v555_v20, 0.0 }
 0x10b   : > { %v515_v24 = vadd.f32 %v1452_v22, %v1894_v0  ;;  %v506_v25 = vpop.f32.mrb[15].mxu0  ;;  %1494 = vmatmul.mubr.bf16.gmra.mrb[24].mxu1 %v619_v9  ;;  %v627_v28 = vpack.c.bf16 %v609_v23, %v608_v14  ;;  %v596_v29 = vmax.f32 %v512_v17, 0.0 }
 0x10c   : > { %v507_v27 = vadd.f32 %v1894_v0, %v506_v25  ;;  %v626_v31 = vpack.c.bf16 %v607_v26, %v606_v19  ;;  %v1467_v32 = vpop.f32.mrb[12].mxu1  ;;  %v594_v33 = vmax.f32 %v504_v21, 0.0 }
 0x10d   : > { %v597_v30 = vmax.f32 %v515_v24, 0.0  ;;  %v576_v36 = vadd.f32 %v1467_v32, %v1894_v0  ;;  %v567_v37 = vpop.f32.mrb[13].mxu1 }
 0x10e   : > { %v595_v34 = vmax.f32 %v507_v27, 0.0  ;;  %v568_v40 = vadd.f32 %v1894_v0, %v567_v37  ;;  %v1468_v41 = vpop.f32.mrb[14].mxu1 }
 0x10f   : > { %v621_v39 = vpack.c.bf16 %v597_v30, %v596_v29  ;;  %v612_v43 = vmax.f32 %v576_v36, 0.0  ;;  %v579_v44 = vadd.f32 %v1468_v41, %v1894_v0  ;;  %v570_v45 = vpop.f32.mrb[15].mxu1 }
 0x110   : > { %v620_v42 = vpack.c.bf16 %v595_v34, %v594_v33  ;;  %v610_v46 = vmax.f32 %v568_v40, 0.0  ;;  %v571_v47 = vadd.f32 %v1894_v0, %v570_v45  ;;  %v1625_v0 = vld [vmem:[%s2066_s5 + $0x30] sm:$0xff]  }
 0x111   : > { %v613_v48 = vmax.f32 %v579_v44, 0.0  ;;  %1529 = vmatprep.subr.bf16.mxu0 %v1625_v0 }
 0x112   : > { %1497 = vmatprep.mubr.bf16.mxu1 %v620_v42  ;;  %v611_v49 = vmax.f32 %v571_v47, 0.0  ;;  %1530 = vmatpush3.bf16.msra.mxu0 %v1625_v0 }
 0x113   : > { %1498 = vmatmul.mubr.bf16.gmra.mrb[28].mxu1 %v621_v39  ;;  %v629_v50 = vpack.c.bf16 %v613_v48, %v612_v43 }
 0x114   : > { %1501 = vmatprep.mubr.bf16.mxu1 %v1910_v38  ;;  %v628_v51 = vpack.c.bf16 %v611_v49, %v610_v46  ;;  %v1626_v38 = vld [vmem:[%s2066_s5 + $0x38] sm:$0xff]  }
 0x115   : > { %1531 = vmatprep.subr.bf16.mxu0 %v1626_v38 }
 0x116   : > { %1532 = vmatpush3.bf16.msra.mxu0 %v1626_v38 }
 0x11b   : > { %1502 = vmatmul.mubr.bf16.gmra.mrb[32].mxu1 %v1908_v35  ;;  %v1943_v35 = vld [vmem:[%s2065_s4] ss:$0 sm:$0xff] }
 0x11c   : > { %1505 = vmatprep.mubr.bf16.mxu1 %v624_v3 }
 0x123   : > { %1506 = vmatmul.mubr.bf16.gmra.mrb[36].mxu1 %v625_v63 }
 0x124   : > { %1509 = vmatprep.mubr.bf16.mxu1 %v626_v31 }
 0x12b   : > { %1510 = vmatmul.mubr.bf16.gmra.mrb[40].mxu1 %v627_v28 }
 0x12c   : > { %1513 = vmatprep.mubr.bf16.mxu1 %v628_v51 }
 0x133   : > { %1514 = vmatmul.mubr.bf16.gmra.mrb[44].mxu1 %v629_v50 }
 0x1ce   : > { %v1487_v52 = vpop.f32.mrb[16].mxu1 }
 0x1cf   : > { %v744_v53 = vadd.f32 %v1487_v52, %v1943_v35  ;;  %v735_v54 = vpop.f32.mrb[17].mxu1 }
 0x1d0   : > { %v736_v55 = vadd.f32 %v1943_v35, %v735_v54  ;;  %v1488_v56 = vpop.f32.mrb[18].mxu1 }
 0x1d1   : > { %v747_v57 = vadd.f32 %v1488_v56, %v1943_v35  ;;  %v738_v58 = vpop.f32.mrb[19].mxu1  ;;  %v864_v60 = vmax.f32 %v744_v53, 0.0 }
 0x1d2   : > { %v739_v59 = vadd.f32 %v1943_v35, %v738_v58  ;;  %v862_v62 = vmax.f32 %v736_v55, 0.0 }
 0x1d3   : > { %v865_v61 = vmax.f32 %v747_v57, 0.0 }
 0x1d4   : > { %v863_v63 = vmax.f32 %v739_v59, 0.0 }
 0x1d5   : > { %v895_v1 = vpack.c.bf16 %v865_v61, %v864_v60 }
 0x1d6   : > { %v894_v2 = vpack.c.bf16 %v863_v63, %v862_v62  ;;  %v1491_v3 = vpop.f32.mrb[20].mxu1 }
 0x1d7   : > { %v760_v4 = vadd.f32 %v1491_v3, %v1943_v35  ;;  %v751_v5 = vpop.f32.mrb[21].mxu1 }
 0x1d8   : > { %v752_v6 = vadd.f32 %v1943_v35, %v751_v5  ;;  %v1492_v7 = vpop.f32.mrb[22].mxu1  ;;  %1533 = vmatprep.mubr.bf16.mxu0 %v894_v2 }
 0x1d9   : > { %v763_v8 = vadd.f32 %v1492_v7, %v1943_v35  ;;  %v754_v9 = vpop.f32.mrb[23].mxu1  ;;  %1534 = vmatmul.mubr.bf16.vlgmr.msra.gmra.mrb[16].mxu0 %v895_v1  ;;  %v868_v11 = vmax.f32 %v760_v4, 0.0 }
 0x1da   : > { %v755_v10 = vadd.f32 %v1943_v35, %v754_v9  ;;  %v866_v13 = vmax.f32 %v752_v6, 0.0 }
 0x1db   : > { %v869_v12 = vmax.f32 %v763_v8, 0.0 }
 0x1dc   : > { %v867_v14 = vmax.f32 %v755_v10, 0.0 }
 0x1dd   : > { %v897_v15 = vpack.c.bf16 %v869_v12, %v868_v11 }
 0x1de   : > { %v896_v16 = vpack.c.bf16 %v867_v14, %v866_v13  ;;  %v1495_v17 = vpop.f32.mrb[24].mxu1 }
 0x1df   : > { %v776_v18 = vadd.f32 %v1495_v17, %v1943_v35  ;;  %v767_v19 = vpop.f32.mrb[25].mxu1 }
 0x1e0   : > { %v768_v20 = vadd.f32 %v1943_v35, %v767_v19  ;;  %v1496_v21 = vpop.f32.mrb[26].mxu1  ;;  %1537 = vmatprep.mubr.bf16.mxu0 %v896_v16 }
 0x1e1   : > { %v779_v22 = vadd.f32 %v1496_v21, %v1943_v35  ;;  %v770_v23 = vpop.f32.mrb[27].mxu1  ;;  %1538 = vmatmul.mubr.bf16.gmra.mrb[20].mxu0 %v897_v15  ;;  %v872_v25 = vmax.f32 %v776_v18, 0.0 }
 0x1e2   : > { %v771_v24 = vadd.f32 %v1943_v35, %v770_v23  ;;  %v870_v27 = vmax.f32 %v768_v20, 0.0 }
 0x1e3   : > { %v873_v26 = vmax.f32 %v779_v22, 0.0 }
 0x1e4   : > { %v871_v28 = vmax.f32 %v771_v24, 0.0 }
 0x1e5   : > { %v899_v29 = vpack.c.bf16 %v873_v26, %v872_v25 }
 0x1e6   : > { %v898_v30 = vpack.c.bf16 %v871_v28, %v870_v27  ;;  %v1499_v31 = vpop.f32.mrb[28].mxu1 }
 0x1e7   : > { %v792_v32 = vadd.f32 %v1499_v31, %v1943_v35  ;;  %v783_v33 = vpop.f32.mrb[29].mxu1 }
 0x1e8   : > { %v784_v34 = vadd.f32 %v1943_v35, %v783_v33  ;;  %v1500_v36 = vpop.f32.mrb[30].mxu1  ;;  %1541 = vmatprep.mubr.bf16.mxu0 %v898_v30 }
 0x1e9   : > { %v795_v37 = vadd.f32 %v1500_v36, %v1943_v35  ;;  %v786_v39 = vpop.f32.mrb[31].mxu1  ;;  %1542 = vmatmul.mubr.bf16.gmra.mrb[24].mxu0 %v899_v29  ;;  %v876_v41 = vmax.f32 %v792_v32, 0.0 }
 0x1ea   : > { %v787_v40 = vadd.f32 %v1943_v35, %v786_v39  ;;  %v874_v43 = vmax.f32 %v784_v34, 0.0 }
 0x1eb   : > { %v877_v42 = vmax.f32 %v795_v37, 0.0 }
 0x1ec   : > { %v875_v44 = vmax.f32 %v787_v40, 0.0  ;;  %v1980_v40 = vld [vmem:[%s2067_s6] ss:$0 sm:$0xff] }
 0x1ed   : > { %v901_v45 = vpack.c.bf16 %v877_v42, %v876_v41 }
 0x1ee   : > { %v900_v46 = vpack.c.bf16 %v875_v44, %v874_v43  ;;  %v1503_v47 = vpop.f32.mrb[32].mxu1 }
 0x1ef   : > { %v808_v48 = vadd.f32 %v1503_v47, %v1943_v35  ;;  %v799_v49 = vpop.f32.mrb[33].mxu1 }
 0x1f0   : > { %v800_v50 = vadd.f32 %v1943_v35, %v799_v49  ;;  %v1504_v51 = vpop.f32.mrb[34].mxu1  ;;  %1545 = vmatprep.mubr.bf16.mxu0 %v900_v46 }
 0x1f1   : > { %v811_v0 = vadd.f32 %v1504_v51, %v1943_v35  ;;  %v802_v38 = vpop.f32.mrb[35].mxu1  ;;  %1546 = vmatmul.mubr.bf16.gmra.mrb[28].mxu0 %v901_v45  ;;  %v880_v53 = vmax.f32 %v808_v48, 0.0 }
 0x1f2   : > { %v803_v52 = vadd.f32 %v1943_v35, %v802_v38  ;;  %v878_v55 = vmax.f32 %v800_v50, 0.0 }
 0x1f3   : > { %v881_v54 = vmax.f32 %v811_v0, 0.0 }
 0x1f4   : > { %v879_v56 = vmax.f32 %v803_v52, 0.0 }
 0x1f5   : > { %v903_v57 = vpack.c.bf16 %v881_v54, %v880_v53 }
 0x1f6   : > { %v902_v58 = vpack.c.bf16 %v879_v56, %v878_v55  ;;  %v1507_v59 = vpop.f32.mrb[36].mxu1 }
 0x1f7   : > { %v824_v60 = vadd.f32 %v1507_v59, %v1943_v35  ;;  %v815_v61 = vpop.f32.mrb[37].mxu1 }
 0x1f8   : > { %v816_v62 = vadd.f32 %v1943_v35, %v815_v61  ;;  %v1508_v63 = vpop.f32.mrb[38].mxu1  ;;  %1549 = vmatprep.mubr.bf16.mxu0 %v902_v58 }
 0x1f9   : > { %v884_v1 = vmax.f32 %v824_v60, 0.0  ;;  %v827_v2 = vadd.f32 %v1508_v63, %v1943_v35  ;;  %v818_v3 = vpop.f32.mrb[39].mxu1  ;;  %1550 = vmatmul.mubr.bf16.gmra.mrb[32].mxu0 %v903_v57 }
 0x1fa   : > { %v882_v4 = vmax.f32 %v816_v62, 0.0  ;;  %v819_v5 = vadd.f32 %v1943_v35, %v818_v3 }
 0x1fb   : > { %v885_v6 = vmax.f32 %v827_v2, 0.0 }
 0x1fc   : > { %v883_v7 = vmax.f32 %v819_v5, 0.0 }
 0x1fd   : > { %v905_v8 = vpack.c.bf16 %v885_v6, %v884_v1 }
 0x1fe   : > { %v904_v9 = vpack.c.bf16 %v883_v7, %v882_v4  ;;  %v1511_v10 = vpop.f32.mrb[40].mxu1 }
 0x1ff   : > { %v840_v11 = vadd.f32 %v1511_v10, %v1943_v35  ;;  %v831_v12 = vpop.f32.mrb[41].mxu1 }
 0x200   : > { %1553 = vmatprep.mubr.bf16.mxu0 %v904_v9  ;;  %v832_v13 = vadd.f32 %v1943_v35, %v831_v12  ;;  %v1512_v14 = vpop.f32.mrb[42].mxu1 }
 0x201   : > { %1554 = vmatmul.mubr.bf16.gmra.mrb[36].mxu0 %v905_v8  ;;  %v888_v15 = vmax.f32 %v840_v11, 0.0  ;;  %v843_v16 = vadd.f32 %v1512_v14, %v1943_v35  ;;  %v834_v17 = vpop.f32.mrb[43].mxu1 }
 0x202   : > { %v886_v18 = vmax.f32 %v832_v13, 0.0  ;;  %v835_v19 = vadd.f32 %v1943_v35, %v834_v17 }
 0x203   : > { %v889_v20 = vmax.f32 %v843_v16, 0.0 }
 0x204   : > { %v887_v21 = vmax.f32 %v835_v19, 0.0 }
 0x205   : > { %v907_v22 = vpack.c.bf16 %v889_v20, %v888_v15 }
 0x206   : > { %v906_v23 = vpack.c.bf16 %v887_v21, %v886_v18  ;;  %v1515_v24 = vpop.f32.mrb[44].mxu1 }
 0x207   : > { %v856_v25 = vadd.f32 %v1515_v24, %v1943_v35  ;;  %v847_v26 = vpop.f32.mrb[45].mxu1 }
 0x208   : > { %1557 = vmatprep.mubr.bf16.mxu0 %v906_v23  ;;  %v848_v27 = vadd.f32 %v1943_v35, %v847_v26  ;;  %v1516_v28 = vpop.f32.mrb[46].mxu1 }
 0x209   : > { %1558 = vmatmul.mubr.bf16.gmra.mrb[40].mxu0 %v907_v22  ;;  %v892_v29 = vmax.f32 %v856_v25, 0.0  ;;  %v859_v30 = vadd.f32 %v1516_v28, %v1943_v35  ;;  %v850_v31 = vpop.f32.mrb[47].mxu1 }
 0x20a   : > { %v890_v32 = vmax.f32 %v848_v27, 0.0  ;;  %v851_v33 = vadd.f32 %v1943_v35, %v850_v31 }
 0x20b   : > { %v893_v34 = vmax.f32 %v859_v30, 0.0 }
 0x20c   : > { %v891_v36 = vmax.f32 %v851_v33, 0.0 }
 0x20d   : > { %v909_v37 = vpack.c.bf16 %v893_v34, %v892_v29 }
 0x20e   : > { %v908_v39 = vpack.c.bf16 %v891_v36, %v890_v32 }
 0x210   : > { %1561 = vmatprep.mubr.bf16.mxu0 %v908_v39 }
 0x211   : > { %1562 = vmatmul.mubr.bf16.gmra.mrb[44].mxu0 %v909_v37 }
 0x2ac   : > { %v1535_v41 = vpop.f32.mrb[16].mxu0 }
 0x2ad   : > { %v1015_v42 = vpop.f32.mrb[17].mxu0  ;;  %v1024_v48 = vadd.f32 %v1535_v41, %v1980_v40 }
 0x2ae   : > { %v1536_v43 = vpop.f32.mrb[18].mxu0  ;;  %v1016_v44 = vadd.f32 %v1980_v40, %v1015_v42 }
 0x2af   : > { %v1018_v45 = vpop.f32.mrb[19].mxu0  ;;  %v1027_v51 = vadd.f32 %v1536_v43, %v1980_v40 }
 0x2b0   : > { %1142 = vxpose.xlu0.b32.start [1/16] (narrow) %v1016_v44, 8  ;;  %v1019_v35 = vadd.f32 %v1980_v40, %v1018_v45 }
 0x2b4   : > { %v1539_v46 = vpop.f32.mrb[20].mxu0  ;;  %1143 = vxpose.xlu0.b32.cont [2/16] (narrow) %v1019_v35, 8 }
 0x2b5   : > { %v1031_v47 = vpop.f32.mrb[21].mxu0  ;;  %v1040_v58 = vadd.f32 %v1539_v46, %v1980_v40 }
 0x2b6   : > { %v1540_v49 = vpop.f32.mrb[22].mxu0  ;;  %v1032_v52 = vadd.f32 %v1980_v40, %v1031_v47 }
 0x2b7   : > { %v1034_v50 = vpop.f32.mrb[23].mxu0  ;;  %v1043_v61 = vadd.f32 %v1540_v49, %v1980_v40 }
 0x2b8   : > { %1144 = vxpose.xlu0.b32.cont [3/16] (narrow) %v1024_v48, 8  ;;  %v1035_v55 = vadd.f32 %v1980_v40, %v1034_v50  ;;  %v1699_v48 = vmov 1966171168   ;;  %v1224_v50 = vlaneseq }
 0x2b9   : > { %v1222_v49 = vunpack.c.l.s4 %v1699_v48 }
 0x2ba   : > { %vm1238_vm1 = vcmp.lt.s32.totalorder %v1224_v50, 256 }
 0x2bc   : > { %v1543_v0 = vpop.f32.mrb[24].mxu0  ;;  %1145 = vxpose.xlu0.b32.cont [4/16] (narrow) %v1027_v51, 8  ;;  %v1223_v51 = vunpack.c.0.s8 %v1222_v49 }
 0x2bd   : > { %v1047_v38 = vpop.f32.mrb[25].mxu0  ;;  %v1056_v9 = vadd.f32 %v1543_v0, %v1980_v40  ;;  %v1225_v0 = vshrl.u32 %v1224_v50, 7 }
 0x2be   : > { %v1544_v53 = vpop.f32.mrb[26].mxu0  ;;  %v1048_v1 = vadd.f32 %v1980_v40, %v1047_v38 }
 0x2bf   : > { %v1050_v54 = vpop.f32.mrb[27].mxu0  ;;  %v1059_v13 = vadd.f32 %v1544_v53, %v1980_v40 }
 0x2c0   : > { %1146 = vxpose.xlu0.b32.cont [5/16] (narrow) %v1032_v52, 8  ;;  %v1051_v5 = vadd.f32 %v1980_v40, %v1050_v54  ;;  %v1226_v52 = vsub.s32 %v1223_v51, %v1225_v0 }
 0x2c4   : > { %v1547_v56 = vpop.f32.mrb[28].mxu0  ;;  %1147 = vxpose.xlu0.b32.cont [6/16] (narrow) %v1035_v55, 8 }
 0x2c5   : > { %v1063_v57 = vpop.f32.mrb[29].mxu0  ;;  %v1072_v30 = vadd.f32 %v1547_v56, %v1980_v40 }
 0x2c6   : > { %v1548_v59 = vpop.f32.mrb[30].mxu0  ;;  %v1064_v18 = vadd.f32 %v1980_v40, %v1063_v57 }
 0x2c7   : > { %v1066_v60 = vpop.f32.mrb[31].mxu0  ;;  %v1075_v39 = vadd.f32 %v1548_v59, %v1980_v40 }
 0x2c8   : > { %1148 = vxpose.xlu0.b32.cont [7/16] (narrow) %v1040_v58, 8  ;;  %v1067_v25 = vadd.f32 %v1980_v40, %v1066_v60 }
 0x2cc   : > { %v1551_v62 = vpop.f32.mrb[32].mxu0  ;;  %1149 = vxpose.xlu0.b32.cont [8/16] (narrow) %v1043_v61, 8 }
 0x2cd   : > { %v1079_v63 = vpop.f32.mrb[33].mxu0  ;;  %v1088_v10 = vadd.f32 %v1551_v62, %v1980_v40 }
 0x2ce   : > { %v1552_v2 = vpop.f32.mrb[34].mxu0  ;;  %v1080_v3 = vadd.f32 %v1980_v40, %v1079_v63 }
 0x2cf   : > { %v1082_v4 = vpop.f32.mrb[35].mxu0  ;;  %v1091_v14 = vadd.f32 %v1552_v2, %v1980_v40 }
 0x2d0   : > { %1174 = vxpose.xlu1.b32.start [1/16] (narrow) %v1080_v3, 8  ;;  %1150 = vxpose.xlu0.b32.cont [9/16] (narrow) %v1048_v1, 8  ;;  %v1083_v6 = vadd.f32 %v1980_v40, %v1082_v4 }
 0x2d4   : > { %v1555_v7 = vpop.f32.mrb[36].mxu0  ;;  %1175 = vxpose.xlu1.b32.cont [2/16] (narrow) %v1083_v6, 8  ;;  %1151 = vxpose.xlu0.b32.cont [10/16] (narrow) %v1051_v5, 8 }
 0x2d5   : > { %v1095_v8 = vpop.f32.mrb[37].mxu0  ;;  %v1104_v31 = vadd.f32 %v1555_v7, %v1980_v40 }
 0x2d6   : > { %v1556_v11 = vpop.f32.mrb[38].mxu0  ;;  %v1096_v19 = vadd.f32 %v1980_v40, %v1095_v8 }
 0x2d7   : > { %v1098_v12 = vpop.f32.mrb[39].mxu0  ;;  %v1107_v41 = vadd.f32 %v1556_v11, %v1980_v40 }
 0x2d8   : > { %1176 = vxpose.xlu1.b32.cont [3/16] (narrow) %v1088_v10, 8  ;;  %1152 = vxpose.xlu0.b32.cont [11/16] (narrow) %v1056_v9, 8  ;;  %v1099_v26 = vadd.f32 %v1980_v40, %v1098_v12 }
 0x2dc   : > { %1177 = vxpose.xlu1.b32.cont [4/16] (narrow) %v1091_v14, 8  ;;  %1153 = vxpose.xlu0.b32.cont [12/16] (narrow) %v1059_v13, 8  ;;  %v1559_v15 = vpop.f32.mrb[40].mxu0 }
 0x2dd   : > { %v1120_v16 = vadd.f32 %v1559_v15, %v1980_v40  ;;  %v1111_v17 = vpop.f32.mrb[41].mxu0 }
 0x2de   : > { %v1112_v20 = vadd.f32 %v1980_v40, %v1111_v17  ;;  %v1560_v21 = vpop.f32.mrb[42].mxu0 }
 0x2df   : > { %v1123_v22 = vadd.f32 %v1560_v21, %v1980_v40  ;;  %v1114_v23 = vpop.f32.mrb[43].mxu0 }
 0x2e0   : > { %1178 = vxpose.xlu1.b32.cont [5/16] (narrow) %v1096_v19, 8  ;;  %1154 = vxpose.xlu0.b32.cont [13/16] (narrow) %v1064_v18, 8  ;;  %v1115_v24 = vadd.f32 %v1980_v40, %v1114_v23 }
 0x2e4   : > { %1179 = vxpose.xlu1.b32.cont [6/16] (narrow) %v1099_v26, 8  ;;  %1155 = vxpose.xlu0.b32.cont [14/16] (narrow) %v1067_v25, 8  ;;  %v1563_v27 = vpop.f32.mrb[44].mxu0 }
 0x2e5   : > { %v1136_v28 = vadd.f32 %v1563_v27, %v1980_v40  ;;  %v1127_v29 = vpop.f32.mrb[45].mxu0 }
 0x2e6   : > { %v1128_v32 = vadd.f32 %v1980_v40, %v1127_v29  ;;  %v1564_v33 = vpop.f32.mrb[46].mxu0 }
 0x2e7   : > { %v1139_v34 = vadd.f32 %v1564_v33, %v1980_v40  ;;  %v1130_v36 = vpop.f32.mrb[47].mxu0 }
 0x2e8   : > { %1180 = vxpose.xlu1.b32.cont [7/16] (narrow) %v1104_v31, 8  ;;  %1156 = vxpose.xlu0.b32.cont [15/16] (narrow) %v1072_v30, 8  ;;  %v1131_v37 = vadd.f32 %v1980_v40, %v1130_v36 }
 0x2ec   : > { %1181 = vxpose.xlu1.b32.cont [8/16] (narrow) %v1107_v41, 8  ;;  %1157 = vxpose.xlu0.b32.end [16/16] (narrow) %v1075_v39, 8 }
 0x2f0   : > { %1182 = vxpose.xlu1.b32.cont [9/16] (narrow) %v1112_v20, 8 }
 0x2f4   : > { %1183 = vxpose.xlu1.b32.cont [10/16] (narrow) %v1115_v24, 8 }
 0x2f8   : > { %1184 = vxpose.xlu1.b32.cont [11/16] (narrow) %v1120_v16, 8 }
 0x2fc   : > { %1185 = vxpose.xlu1.b32.cont [12/16] (narrow) %v1123_v22, 8 }
 0x300   : > { %1186 = vxpose.xlu1.b32.cont [13/16] (narrow) %v1128_v32, 8 }
 0x304   : > { %1187 = vxpose.xlu1.b32.cont [14/16] (narrow) %v1131_v37, 8 }
 0x308   : > { %1188 = vxpose.xlu1.b32.cont [15/16] (narrow) %v1136_v28, 8 }
 0x30c   : > { %1189 = vxpose.xlu1.b32.end [16/16] (narrow) %v1139_v34, 8 }
 0x330   : > { %v1158_v42 = vpop.trf.xlu0 }
 0x331   : > { %v1359_v43 = vmul.f32 -1.442695, %v1158_v42 }
 0x333   : > { %1627 = vpow2.f32 %v1359_v43 }
 0x33d   : > { %v1628_v35 = vpop.eup %1627 }
 0x33e   : > { %v1212_v46 = vadd.f32 1.0, %v1628_v35 }
 0x350   : > { %v1190_v44 = vpop.trf.xlu1 }
 0x351   : > { %v1360_v45 = vmul.f32 -1.442695, %v1190_v44 }
 0x353   : > { %1629 = vpow2.f32 %v1360_v45 }
 0x354   : > { %1631 = vrcp.f32 %v1212_v46 }
 0x35d   : > { %v1630_v40 = vpop.eup %1629 }
 0x35e   : > { %v1213_v47 = vadd.f32 1.0, %v1630_v40  ;;  %v1632_v38 = vpop.eup %1631 }
 0x360   : > { %1633 = vrcp.f32 %v1213_v47 }
 0x36a   : > { %v1634_v53 = vpop.eup %1633 }
 0x36b   : > { %v1220_v54 = vcombine.low %v1632_v38, %v1634_v53 }
 0x36d   : > { %v1227_v55 = vrot.slane %v1220_v54, %v1226_v52 }
 0x36f   : > { %v1234_v56 = vrot.slane %v1227_v55, %v1226_v52 }
 0x371   : > { %1240 = vst.msk [vmem:[%s284_s21] sm:$0x3] %vm1238_vm1, %v1234_v56 }
 0x372   : > { %1648 = shalt.err (!%p1645_p3)
}
 0x373   : > { %s1649_s15 = scalar_lea.hbm %s2019_s28, 32  ;;  %s1653_s19 = scalar_lea.hbm %s2068_s7, 64 }
 0x374   : > { %p1650_p4 = scmp.ne.s32.totalorder %s2019_s28, %s1649_s15  ;;  %p1654_p9 = scmp.lt.u32.totalorder %s2019_s28, %s2068_s7 }
 0x375   : > { %p1655_p10 = scmp.lt.u32.totalorder %s1653_s19, %s1649_s15  ;;  %p1657_p12 = scmp.lt.u32.totalorder %s1649_s15, %s2019_s28 }
 0x376   : > { %p1651_p7 = pnand %p1650_p4, %p1776_p5 }
 0x377   : > { %p1656_p11 = por %p1655_p10, %p1654_p9 }
 0x378   : > { %p1652_p8 = pneg %p1651_p7 }
 0x379   : > { %p1658_p13 = por %p1657_p12, %p1656_p11 }
 0x37b   : > { %p1659_p0 = pnand %p1658_p13, %p1652_p8 }
 0x37d   : > { %1662 = shalt.err (!%p1659_p0)
}
 0x37e   : > { %1569 = dma.vmem_to_hbm [thread:$0]  (%p1776_p5), %s2021_s22, 32, %s2019_s28, %s1242_s8  }
 0x37f PF: > { %p1575_p1 = scmp.ge.s32.totalorder %s1697_s27, 2  ;;  %s1268_s23 = sand.u32 1, %s1685_s24  }
 0x380   : > { %s1269_s29 = scalar_lea.sflag [#allocation3], %s1268_s23 }
 0x381   : > { %p1572_p2 = pnand %p1575_p1, %p1780_p6 }
 0x383   : > { %1680 = dma.done.wait (!%p1572_p2), %s1269_s29, 32  }
 0x384   : > { %1682 = vsyncadd (!%p1572_p2), %s1269_s29, 4294967264  ;;  %p17_p3 = scmp.ge.s32.totalorder %s1764_s30, 4   ;;  %s2071_s24 = smov %s1689_s25 }
 0x385   : > { %s2072_s25 = smov %s1693_s26  ;;  %s2073_s26 = smov %s1774_s10 }
 0x386   : > { %s2074_s27 = smov %s1764_s30  ;;  %19 = sbr.rel (!%p17_p3) target bundleno = 3 (0x3), region = 83 }
 0x38d   :  { %1274 = vsyncpa [#allocation3], 1 }
 0x38e   :  { %1276 = vsyncpa [#allocation3 + $0x1], 1 }

</bundles_post_ra>
